<compile_context>
chip_gen: v7x
topology: tpu7x:2x2x1
jax: 0.10.0
libtpu: 0.0.40
codegen_flags: <defaults>
</compile_context>

<pallas_src>
import functools
import math

import jax
import jax.numpy as jnp
from jax import lax
from jax.experimental import pallas as pl
from jax.experimental.pallas import tpu as pltpu


def _gfl_kernel(sigma_ref, pc_ref, alpha_ref, out_ref, *, log_threshold, J, n_valid):
    # pc_ref:    (B_TILE, N_pad, d)  tile of point clouds
    # alpha_ref: (1, d)              this grid step's weight row (selected by BlockSpec)
    # out_ref:   (B_TILE, J, d)      this (cloud-tile, weight)'s output
    b_tile, n, d = pc_ref.shape

    alpha = alpha_ref[...]                       # (1, d)
    s = -1.0 / sigma_ref[0]                      # hoisted scalar (no N^2 divides)

    ones_col = jnp.ones((n, 1), jnp.float32)
    ones_row = jnp.ones((1, n), jnp.float32)

    padded = n_valid != n                        # trace-time bool (static shapes)
    if padded:
        row_ids = lax.broadcasted_iota(jnp.int32, (n, 1), 0)
        # folded into the augmented matmul: scaled[r,c] gets bias[r]+bias[c]
        bias_col = jnp.where(row_ids >= n_valid, -1e30, 0.0).astype(jnp.float32)
        pad_row = (lax.broadcasted_iota(jnp.int32, (1, n), 1) >= n_valid
                   ).astype(jnp.float32)         # 1.0 on padded columns

    def one_cloud(b):
        xb = pc_ref[b] * alpha                                   # (N, d)
        sq = jnp.sum(xb * xb, axis=1, keepdims=True)             # (N, 1)
        aug = s * sq
        if padded:
            aug = aug + bias_col                                 # -1e30 on padded rows

        # One augmented MXU matmul builds scaled = -dist/sigma (+ pad bias):
        #   scaled[r,c] = -2s*xb[r].xb[c] + (s*sq[r]+bias[r]) + (s*sq[c]+bias[c])
        a_mat = jnp.concatenate([(-2.0 * s) * xb, aug, ones_col], axis=1)  # (N, d+2)
        b_mat = jnp.concatenate([xb, ones_col, aug], axis=1)               # (N, d+2)
        scaled = lax.dot_general(a_mat, b_mat, (((1,), (1,)), ((), ())),
                                 preferred_element_type=jnp.float32)       # (N, N)

        # Threshold fused as a compare on scaled (co-issues with the EUP exp);
        # w < threshold  <=>  scaled < log(threshold). Padded rows/cols give
        # scaled ~ -1e30 -> dropped.
        w = jnp.where(scaled >= log_threshold, jnp.exp(scaled), 0.0)

        # Column sums == 1^T W: reuse as both the normalizer and the first
        # diffusion matvec (dedup of the axis-0 reduction).
        t = jnp.dot(ones_row, w, preferred_element_type=jnp.float32)       # (1, N)
        dcol = t
        if padded:
            dcol = t + pad_row                   # avoid 0-division on padded cols
        inv_d = pl.reciprocal(dcol, approx=False)

        # Lazy random walk P = 0.5*W_norm + 0.5*I, pooled over nodes:
        #   pooled_t = 1^T P^t X_bar = v_t @ X_bar,  v_t = v_{t-1} @ P.
        v = 0.5 * (t * inv_d + ones_row)
        feats = [jnp.dot(v, xb, preferred_element_type=jnp.float32)]       # (1, d)
        for _ in range(J - 1):
            v = 0.5 * (jnp.dot(v, w, preferred_element_type=jnp.float32) * inv_d + v)
            feats.append(jnp.dot(v, xb, preferred_element_type=jnp.float32))

        out_ref[b] = jnp.concatenate(feats, axis=0)                        # (J, d)

    if b_tile == 1:
        one_cloud(0)
    else:
        # Non-unrolled loop bounds the live set to one cloud's temporaries.
        @pl.loop(0, b_tile)
        def _(b):
            one_cloud(b)


def graph_feat_learning_forward(point_clouds, alphas, sigma, threshold, J=3):
    """point_clouds: (B_pc, N, d) f32; alphas: (nw, d) f32 -> (B_pc, nw*J*d)."""
    B, N, d = point_clouds.shape
    nw = alphas.shape[0]
    J = int(J)

    # Pad N: multiple of 8 for small N, full lane width (128) beyond that --
    # the (N,N) temporaries occupy whole 128-lane tiles anyway, so the extra
    # padding costs nothing and removes masked lane tiles / partial stores.
    if N > 128:
        n_pad = ((N + 127) // 128) * 128
    else:
        n_pad = max(8, ((N + 7) // 8) * 8)

    pc = point_clouds.astype(jnp.float32)
    if n_pad != N:
        pc = jnp.pad(pc, ((0, 0), (0, n_pad - N), (0, 0)))

    # Batch several clouds per grid step at small N (amortize per-step overhead);
    # one cloud per step once the per-cloud (N,N) work dominates.
    if n_pad >= 512:
        b_cap = 1
    else:
        b_cap = max(1, min(32, (1 << 20) // max(n_pad * d * 4, 1)))
    n_b_blocks = pl.cdiv(B, min(B, b_cap))
    b_tile = pl.cdiv(B, n_b_blocks)
    b_padded = n_b_blocks * b_tile
    if b_padded != B:
        pc = jnp.pad(pc, ((0, b_padded - B), (0, 0), (0, 0)))   # zero clouds, dropped later

    alphas3 = alphas.astype(jnp.float32).reshape(nw, 1, d)      # per-weight (1,d) blocks
    sigma_arr = jnp.asarray([sigma], dtype=jnp.float32)
    log_threshold = math.log(threshold) if threshold > 0 else -float("inf")

    kernel = functools.partial(_gfl_kernel, log_threshold=float(log_threshold),
                               J=J, n_valid=int(N))

    # Generation-aware VMEM request: estimate the live working set and cap at
    # ~85% of the queried physical VMEM (64 MiB on v7x, 128 MiB on v5e/v6e).
    est = 4 * (2 * n_pad * n_pad                 # scaled + w
               + 4 * n_pad * (d + 2)             # augmented A / Bm
               + 3 * b_tile * n_pad * d          # pc block (double-buffered) + xb
               + 4 * b_tile * J * d              # output blocks
               + (1 << 16))
    try:
        cap_bytes = int(pltpu.get_tpu_info().vmem_capacity_bytes)
    except Exception:
        cap_bytes = 64 * 1024 * 1024             # conservative fallback (fits all gens)
    vmem_limit = int(min(max(int(est * 1.5), 32 * 1024 * 1024), int(cap_bytes * 0.85)))

    out = pl.pallas_call(
        kernel,
        out_shape=jax.ShapeDtypeStruct((b_padded, nw, J, d), jnp.float32),
        grid=(n_b_blocks, nw),                   # both parallel -> feeds both v7x TCs
        in_specs=[
            pl.BlockSpec(memory_space=pltpu.MemorySpace.SMEM),            # sigma scalar
            pl.BlockSpec((b_tile, n_pad, d), lambda pb, i: (pb, 0, 0)),   # cloud tile
            pl.BlockSpec((None, 1, d), lambda pb, i: (i, 0, 0)),          # weight row i
        ],
        out_specs=pl.BlockSpec((b_tile, None, J, d), lambda pb, i: (pb, i, 0, 0)),
        compiler_params=pltpu.CompilerParams(
            dimension_semantics=("parallel", "parallel"),
            vmem_limit_bytes=vmem_limit,
        ),
    )(sigma_arr, pc, alphas3)

    # Rows ordered (p; i major, t, d minor) -> matches features.view(B_pc, F*nw).
    return out[:B].reshape(B, nw * J * d)


def _reference(point_clouds, alphas, sigma, threshold, J):
    """Pure-JAX reference mirroring the PyTorch semantics (dense graph form)."""
    B, N, d = point_clouds.shape
    nw = alphas.shape[0]
    out_rows = []
    for p in range(B):
        row = []
        for i in range(nw):
            xb = point_clouds[p] * alphas[i]
            g = xb @ xb.T
            dg = jnp.diag(g)
            dist = dg[None, :] + dg[:, None] - 2.0 * g
            w = jnp.exp(-dist / sigma)
            w = jnp.where(w < threshold, 0.0, w)
            w = w / w.sum(0)
            P = 0.5 * w + 0.5 * jnp.eye(N, dtype=jnp.float32)
            y = xb
            fs = []
            for _ in range(J):
                y = P @ y
                fs.append(y.sum(0))
            row.append(jnp.concatenate(fs))
        out_rows.append(jnp.concatenate(row))
    return jnp.stack(out_rows)


if __name__ == "__main__":
    import numpy as np

    # Config 1: module-consistent small shapes (exercises the B_TILE > 1 path).
    B_pc, N, d = 2, 16, 8
    n_weights, J = 3, 3
    sigma, threshold = 1.0, 0.1

    key = jax.random.PRNGKey(0)
    k_pc, k_alpha = jax.random.split(key)
    point_clouds = jax.random.normal(k_pc, (B_pc, N, d), dtype=jnp.float32)
    # alphas ~ torch.rand((n_weights, dimension)): uniform [0, 1)
    alphas = jax.random.uniform(k_alpha, (n_weights, d), dtype=jnp.float32)

    out = graph_feat_learning_forward(point_clouds, alphas, sigma, threshold, J)
    out = jax.block_until_ready(out)
    assert out.shape == (B_pc, n_weights * J * d), out.shape
    ref = _reference(point_clouds, alphas, sigma, threshold, J)
    np.testing.assert_allclose(np.asarray(out), np.asarray(ref), rtol=3e-4, atol=2e-5)

    # Config 2: N not a multiple of 8 -> exercises the padding / mask-bias path.
    B2, N2, d2, nw2 = 3, 13, 4, 2
    k1, k2 = jax.random.split(jax.random.PRNGKey(1))
    pc2 = jax.random.normal(k1, (B2, N2, d2), dtype=jnp.float32)
    al2 = jax.random.uniform(k2, (nw2, d2), dtype=jnp.float32)
    out2 = jax.block_until_ready(graph_feat_learning_forward(pc2, al2, 0.7, 0.2, J))
    ref2 = _reference(pc2, al2, 0.7, 0.2, J)
    np.testing.assert_allclose(np.asarray(out2), np.asarray(ref2), rtol=3e-4, atol=2e-5)

    print("KERNEL_OK")
</pallas_src>

<mosaic_0001>
module attributes {stable_mosaic.version = 11 : i64} {
  func.func @_gfl_kernel(%arg0: i32, %arg1: i32, %arg2: memref<1xf32, #tpu.memory_space<smem>>, %arg3: memref<2x16x8xf32, #tpu.memory_space<vmem>>, %arg4: memref<1x1x8xf32, #tpu.memory_space<vmem>>, %arg5: memref<2x1x3x8xf32, #tpu.memory_space<vmem>>) attributes {dimension_semantics = [#tpu.dimension_semantics<parallel>, #tpu.dimension_semantics<parallel>], iteration_bounds = array<i64: 1, 3>, scalar_prefetch = 0 : i64, scratch_operands = 0 : i64, tpu.core_type = #tpu.core_type<tc>, window_params = [{transform_indices = @transform_0, window_bounds = array<i64: 1>}, {transform_indices = @transform_1, window_bounds = array<i64: 2, 16, 8>}, {transform_indices = @transform_2, window_bounds = array<i64: 1, 1, 8>}, {transform_indices = @transform_3, window_bounds = array<i64: 2, 1, 3, 8>}]} {
    %c0 = arith.constant 0 : index
    %c0_0 = arith.constant 0 : index
    %c0_1 = arith.constant 0 : index
    %0 = vector.load %arg4[%c0, %c0_0, %c0_1] : memref<1x1x8xf32, #tpu.memory_space<vmem>>, vector<1x1x8xf32>
    %1 = vector.shape_cast %0 : vector<1x1x8xf32> to vector<1x8xf32>
    %c0_2 = arith.constant 0 : index
    %2 = memref.load %arg2[%c0_2] : memref<1xf32, #tpu.memory_space<smem>>
    %cst = arith.constant -1.000000e+00 : f32
    %3 = arith.divf %cst, %2 : f32
    %cst_3 = arith.constant 1.000000e+00 : f32
    %4 = vector.broadcast %cst_3 : f32 to vector<16x1xf32>
    %cst_4 = arith.constant 1.000000e+00 : f32
    %5 = vector.broadcast %cst_4 : f32 to vector<1x16xf32>
    %c0_i32 = arith.constant 0 : i32
    %c2_i32 = arith.constant 2 : i32
    %6 = arith.addi %c0_i32, %c2_i32 : i32
    %c1_i32 = arith.constant 1 : i32
    scf.for %arg6 = %c0_i32 to %6 step %c1_i32  : i32 {
      %c1_i32_6 = arith.constant 1 : i32
      %7 = arith.muli %arg6, %c1_i32_6 : i32
      %c0_i32_7 = arith.constant 0 : i32
      %8 = arith.addi %c0_i32_7, %7 : i32
      %9 = arith.index_cast %8 : i32 to index
      %c0_8 = arith.constant 0 : index
      %c0_9 = arith.constant 0 : index
      %10 = vector.load %arg3[%9, %c0_8, %c0_9] : memref<2x16x8xf32, #tpu.memory_space<vmem>>, vector<1x16x8xf32>
      %11 = vector.shape_cast %10 : vector<1x16x8xf32> to vector<16x8xf32>
      %12 = vector.broadcast %1 : vector<1x8xf32> to vector<16x8xf32>
      %13 = arith.mulf %11, %12 : vector<16x8xf32>
      %14 = arith.mulf %13, %13 : vector<16x8xf32>
      %cst_10 = arith.constant dense<0.000000e+00> : vector<16xf32>
      %15 = vector.multi_reduction <add>, %14, %cst_10 [1] : vector<16x8xf32> to vector<16xf32>
      %16 = vector.shape_cast %15 : vector<16xf32> to vector<16x1xf32>
      %17 = vector.broadcast %3 : f32 to vector<16x1xf32>
      %18 = arith.mulf %17, %16 : vector<16x1xf32>
      %cst_11 = arith.constant -2.000000e+00 : f32
      %19 = arith.mulf %cst_11, %3 : f32
      %20 = vector.broadcast %19 : f32 to vector<16x8xf32>
      %21 = arith.mulf %20, %13 : vector<16x8xf32>
      %22 = tpu.concatenate %21, %18, %4 in 1 : vector<16x8xf32>, vector<16x1xf32>, vector<16x1xf32> -> vector<16x10xf32>
      %23 = tpu.concatenate %13, %4, %18 in 1 : vector<16x8xf32>, vector<16x1xf32>, vector<16x1xf32> -> vector<16x10xf32>
      %cst_12 = arith.constant dense<0.000000e+00> : vector<16x16xf32>
      %24 = tpu.matmul %22, %23, %cst_12 {dimension_numbers = #tpu.dot_dimension_numbers<[1], [1], [0], [0], [0, 0, 1, 0], [], []>} : vector<16x10xf32>, vector<16x10xf32>, vector<16x16xf32> -> vector<16x16xf32>
      %cst_13 = arith.constant -2.30258512 : f32
      %25 = vector.broadcast %cst_13 : f32 to vector<16x16xf32>
      %26 = arith.cmpf oge, %24, %25 : vector<16x16xf32>
      %27 = math.exp %24 : vector<16x16xf32>
      %cst_14 = arith.constant 0.000000e+00 : f32
      %28 = vector.broadcast %cst_14 : f32 to vector<16x16xf32>
      %29 = arith.select %26, %27, %28 : vector<16x16xi1>, vector<16x16xf32>
      %cst_15 = arith.constant dense<0.000000e+00> : vector<1x16xf32>
      %30 = tpu.matmul %5, %29, %cst_15 {dimension_numbers = #tpu.dot_dimension_numbers<[1], [0], [0], [1], [0, 0, 1, 1], [], []>} : vector<1x16xf32>, vector<16x16xf32>, vector<1x16xf32> -> vector<1x16xf32>
      %31 = tpu.reciprocal %30 : vector<1x16xf32> -> vector<1x16xf32>
      %32 = arith.mulf %30, %31 : vector<1x16xf32>
      %33 = arith.addf %32, %5 : vector<1x16xf32>
      %cst_16 = arith.constant 5.000000e-01 : f32
      %34 = vector.broadcast %cst_16 : f32 to vector<1x16xf32>
      %35 = arith.mulf %34, %33 : vector<1x16xf32>
      %cst_17 = arith.constant dense<0.000000e+00> : vector<1x8xf32>
      %36 = tpu.matmul %35, %13, %cst_17 {dimension_numbers = #tpu.dot_dimension_numbers<[1], [0], [0], [1], [0, 0, 1, 1], [], []>} : vector<1x16xf32>, vector<16x8xf32>, vector<1x8xf32> -> vector<1x8xf32>
      %cst_18 = arith.constant dense<0.000000e+00> : vector<1x16xf32>
      %37 = tpu.matmul %35, %29, %cst_18 {dimension_numbers = #tpu.dot_dimension_numbers<[1], [0], [0], [1], [0, 0, 1, 1], [], []>} : vector<1x16xf32>, vector<16x16xf32>, vector<1x16xf32> -> vector<1x16xf32>
      %38 = arith.mulf %37, %31 : vector<1x16xf32>
      %39 = arith.addf %38, %35 : vector<1x16xf32>
      %cst_19 = arith.constant 5.000000e-01 : f32
      %40 = vector.broadcast %cst_19 : f32 to vector<1x16xf32>
      %41 = arith.mulf %40, %39 : vector<1x16xf32>
      %cst_20 = arith.constant dense<0.000000e+00> : vector<1x8xf32>
      %42 = tpu.matmul %41, %13, %cst_20 {dimension_numbers = #tpu.dot_dimension_numbers<[1], [0], [0], [1], [0, 0, 1, 1], [], []>} : vector<1x16xf32>, vector<16x8xf32>, vector<1x8xf32> -> vector<1x8xf32>
      %cst_21 = arith.constant dense<0.000000e+00> : vector<1x16xf32>
      %43 = tpu.matmul %41, %29, %cst_21 {dimension_numbers = #tpu.dot_dimension_numbers<[1], [0], [0], [1], [0, 0, 1, 1], [], []>} : vector<1x16xf32>, vector<16x16xf32>, vector<1x16xf32> -> vector<1x16xf32>
      %44 = arith.mulf %43, %31 : vector<1x16xf32>
      %45 = arith.addf %44, %41 : vector<1x16xf32>
      %cst_22 = arith.constant 5.000000e-01 : f32
      %46 = vector.broadcast %cst_22 : f32 to vector<1x16xf32>
      %47 = arith.mulf %46, %45 : vector<1x16xf32>
      %cst_23 = arith.constant dense<0.000000e+00> : vector<1x8xf32>
      %48 = tpu.matmul %47, %13, %cst_23 {dimension_numbers = #tpu.dot_dimension_numbers<[1], [0], [0], [1], [0, 0, 1, 1], [], []>} : vector<1x16xf32>, vector<16x8xf32>, vector<1x8xf32> -> vector<1x8xf32>
      %49 = tpu.concatenate %36, %42, %48 in 0 : vector<1x8xf32>, vector<1x8xf32>, vector<1x8xf32> -> vector<3x8xf32>
      %50 = arith.index_cast %8 : i32 to index
      %c0_24 = arith.constant 0 : index
      %c0_25 = arith.constant 0 : index
      %c0_26 = arith.constant 0 : index
      %51 = vector.load %arg5[%50, %c0_24, %c0_25, %c0_26] : memref<2x1x3x8xf32, #tpu.memory_space<vmem>>, vector<1x1x3x8xf32>
      %52 = vector.shape_cast %51 : vector<1x1x3x8xf32> to vector<3x8xf32>
      %53 = vector.shape_cast %49 : vector<3x8xf32> to vector<1x1x3x8xf32>
      tpu.vector_store %arg5[%50, %c0_24, %c0_25, %c0_26], %53 {strides = array<i32>} : memref<2x1x3x8xf32, #tpu.memory_space<vmem>>, vector<1x1x3x8xf32>,
    }
    %c2_i32_5 = arith.constant 2 : i32
    return
  }
  func.func @transform_0(%arg0: i32, %arg1: i32) -> i32 {
    %c0_i32 = arith.constant 0 : i32
    %c0_i32_0 = arith.constant 0 : i32
    return %c0_i32 : i32
  }
  func.func @transform_1(%arg0: i32, %arg1: i32) -> (i32, i32, i32) {
    %c0_i32 = arith.constant 0 : i32
    %c0_i32_0 = arith.constant 0 : i32
    %c0_i32_1 = arith.constant 0 : i32
    return %arg0, %c0_i32, %c0_i32_0 : i32, i32, i32
  }
  func.func @transform_2(%arg0: i32, %arg1: i32) -> (i32, i32, i32) {
    %c0_i32 = arith.constant 0 : i32
    %c0_i32_0 = arith.constant 0 : i32
    %c0_i32_1 = arith.constant 0 : i32
    return %arg1, %c0_i32, %c0_i32_0 : i32, i32, i32
  }
  func.func @transform_3(%arg0: i32, %arg1: i32) -> (i32, i32, i32, i32) {
    %c0_i32 = arith.constant 0 : i32
    %c0_i32_0 = arith.constant 0 : i32
    %c0_i32_1 = arith.constant 0 : i32
    return %arg0, %arg1, %c0_i32, %c0_i32_0 : i32, i32, i32, i32
  }
}

</mosaic_0001>

<bundles_post_ra>
// kernel: tpu_custom_call.1
= control target key start
LH: loop header
LB: loop body
LE: loop exit
PB: predicated region body
PF: predicated region fallthrough
CT: control target
= control target key end

     0   :  { %s1335_s0 = inlined_call_operand.<no memory space> [shape: f32[1], index: 0, kind: input, shape index: {}]   ;;  %s1336_s1 = inlined_call_operand.vmem [shape: f32[2,16,8], index: 1, kind: input, shape index: {}]   ;;  %s1337_s2 = inlined_call_operand.vmem [shape: f32[3,1,8], index: 2, kind: input, shape index: {}]   ;;  %s1338_s3 = inlined_call_operand.vmem [shape: f32[2,3,3,8], index: 3, kind: output, shape index: {}]  }
   0x1   :  { %8 = sst [smem:[#allocation2]] %s1335_s0 }
   0x2   :  { %s1204_s14 = smov 0   ;;  %s1206_s15 = smov 0  }
   0x3   :  { %s1208_s16 = smov 0   ;;  %s1210_s17 = smov 0  }
   0x4   :  { %s1212_s18 = smov 0  }
   0x5 LB: > { %s939_s0 = sadd.s32 4294967295, %s1171_s18   ;;  %s23_s19 = sadd.s32 1, %s1167_s17  ;;  %s1171_s18 = sphi %s1212_s18, %s14_s18   ;;  %s1167_s17 = sphi %s1210_s17, %s1345_s17   ;;  %s1163_s16 = sphi %s1208_s16, %s1344_s16   ;;  %s1159_s15 = sphi %s1206_s15, %s1343_s15   ;;  %s1155_s14 = sphi %s1204_s14, %s1342_s14  }
   0x6   : > { %p24_p0 = scmp.ge.s32.totalorder %s23_s19, 3  ;;  %s108_s20 = sadd.s32 1, %s1159_s15 }
   0x7   : > { %p118_p1 = scmp.ne.s32.totalorder %s1159_s15, %s1155_s14  ;;  %p119_p2 = scmp.eq.s32.totalorder %s939_s0, 2 }
   0x8   : > { %s1347_s19 = smov (%p24_p0, %s23_s19), 0  ;;  %p944_p4 = scmp.ge.s32.totalorder %s1171_s18, 1 }
   0x9   : > { %p1233_p3 = por %p119_p2, %p118_p1  ;;  %s104_s22 = ssub.s32 %s1167_s17, %s1347_s19 }
   0xa   : > { %p162_p5 = scmp.lt.s32.totalorder %s1171_s18, 4  ;;  %p106_p6 = scmp.eq.s32.totalorder %s104_s22, 0 }
   0xc   : > { %p163_p7 = pnand %p944_p4, %p162_p5 }
   0xd   : > { %s1242_s23 = scalar_select %p106_p6, %s1159_s15, %s108_s20  }
   0xe   : > { %166 = sbr.rel (%p163_p7) target bundleno = 1372 (0x55c), region = 32  ;;  %s186_s24 = sand.u32 (!%p163_p7), 1, %s1155_s14  }
   0xf   : > { %p196_p8 = scmp.lt.s32.totalorder (!%p163_p7), %s1163_s16, 2  ;;  %s945_s25 = sshll.u32 (!%p163_p7), %s186_s24, 3 }
  0x10   : > { %s201_s26 = sld [smem:[#allocation2]] (!%p163_p7)  ;;  %s1254_s6 = scalar_lea.vmem (!%p163_p7), [#allocation3], %s945_s25 }
  0x11   : > { %s1256_s7 = smov (!%p163_p7), 0  }
  0x15   : > { %s197_s27 = scalar_select %p196_p8, %s1163_s16, 2 }
  0x16   : > { %v202_v1 = vstv %s201_s26 }
  0x17   : > { %s198_s30 = scalar_lea.vmem %s1337_s2, %s197_s27  ;;  %1121 = vrcp.f32 %v202_v1 }
  0x18   : > { %v1249_v0 = vld [vmem:[%s198_s30] ss:$0 sm:$0xff] }
  0x21   : > { %v1122_v2 = vpop.eup %1121 }
  0x22   : > { %1067 = vpush %v1122_v2 }
  0x53   : > { %s1251_s4 = spop %1067 }
  0x54   : > { %s205_s5 = smul.f32 -1.0, %s1251_s4 }
  0x55 LB: >> { %s946_s8 = sshll.u32 %s1175_s7, 4  ;;  %vm226_vm0 = vcmask 64512   ;;  %vm242_vm1 = vcmask 72704   ;;  %vm249_vm2 = vcmask 80896   ;;  %v1177_v28 = vmov 0.0|0.0   ;;  %s964_s13 = sshll.u32 %s1175_s7, 2  ;;  %s1175_s7 = sphi %s1256_s7, %s211_s7  }
  0x56   : >> { %s213_s11 = scalar_lea.vmem %s1336_s1, %s946_s8  ;;  %s236_s12 = smul.f32 -2.0, %s205_s5  ;;  %v233_v12 = vstv %s205_s5  ;;  %vm1041_vm3 = vmpackc.low %vm249_vm2, %vm249_vm2  ;;  %1046 = vmatprep.subr.bf16.mxu1 %v1177_v28  ;;  %vm1178_vm4 = vmmov 0   ;;  %v1179_v29 = vmov 0.0   ;;  %vm345_vm8 = vcmask 130048  }
  0x57   : >> { %v214_v3 = vld [vmem:[%s213_s11] sm:$0xff]  ;;  %v215_v4 = vld [vmem:[%s213_s11 + $0x8] sm:$0xff]  ;;  %1002 = vmatprep.mubr.msk.f32.mxu1 %vm1178_vm4, %v1179_v29  ;;  %v1180_v38 = vmov 1.0   ;;  %vm794_vm9 = vcmask 1040384   ;;  %vm796_vm10 = vcmask 1041408   ;;  %s799_s14 = scalar_lea.vmem %s1254_s6, %s964_s13 [#allocation3]  ;;  %vm800_vm11 = vcmask 59392  }
  0x58   : >> { %v222_v5 = vmul.f32 %v1249_v0, %v214_v3  ;;  %v223_v6 = vmul.f32 %v1249_v0, %v215_v4  ;;  %v237_v11 = vstv %s236_s12  ;;  %s211_s7 = sadd.s32 1, %s1175_s7  }
  0x59   : >> { %p208_p9 = scmp.ge.s32.totalorder %s211_s7, 2  }
  0x5a   : >> { %v224_v7 = vmul.f32 %v222_v5, %v222_v5  ;;  %v225_v8 = vmul.f32 %v223_v6, %v223_v6  ;;  %v238_v13 = vmul.f32 %v237_v11, %v222_v5  ;;  %v245_v19 = vsel %vm226_vm0, %v222_v5, 1.0 }
  0x5b   : >> { %v246_v20 = vsel %vm226_vm0, %v223_v6, 1.0  ;;  %v239_v25 = vmul.f32 %v237_v11, %v223_v6  ;;  %v1051_v39 = vpack.c.bf16 %v223_v6, %v222_v5 }
  0x5c   : >> { %v227_v9 = vsel %vm226_vm0, %v224_v7, 0.0  ;;  %v230_v10 = vsel %vm226_vm0, %v225_v8, 0.0 }
  0x5d   : >> { %228 = vadd.xlane.f32.xlu0 %v227_v9 }
  0x61   : >> { %231 = vadd.xlane.f32.xlu0 %v230_v10 }
  0xea   : >> { %v229_v14 = vpop.xlane.xlu0 %228 }
  0xeb   : >> { %v234_v15 = vmul.f32 %v233_v12, %v229_v14 }
  0xed   : >> { %v240_v16 = vsel %vm226_vm0, %v238_v13, %v234_v15  ;;  %v247_v22 = vsel %vm242_vm1, %v245_v19, %v234_v15 }
  0xee   : >> { %v232_v17 = vpop.xlane.xlu0 %231  ;;  %v243_v18 = vsel %vm242_vm1, %v240_v16, 1.0 }
  0xef   : >> { %v235_v21 = vmul.f32 %v233_v12, %v232_v17  ;;  %995 = vmatprep.mubr.msk.f32.mxu0 %vm249_vm2, %v243_v18 }
  0xf1   : >> { %v248_v23 = vsel %vm242_vm1, %v246_v20, %v235_v21  ;;  %v241_v26 = vsel %vm226_vm0, %v239_v25, %v235_v21 }
  0xf2   : >> { %v1040_v24 = vpack.c.bf16 %v248_v23, %v247_v22  ;;  %v244_v27 = vsel %vm242_vm1, %v241_v26, 1.0 }
  0xf4   : >> { %1042 = vmatprep.subr.msk.bf16.mxu0 %vm1041_vm3, %v1040_v24 }
  0xf5   : >> { %1045 = vmatpush3.bf16.xpose.msk.msra.mxu0 %vm1041_vm3, %v1040_v24 }
  0xf6   : >> { %1053 = vmatprep.subr.bf16.mxu0 %v1177_v28 }
  0xfc   : >> { %996 = vmatmul.mubr.msk.f32.vlgmr.msra.gmra.mrb[0].mxu0 %vm249_vm2, %v244_v27 }
  0xfd   : >> { %1016 = vmatprep.mubr.msk.f32.mxu0 %vm1178_vm4, %v1179_v29 }
 0x1cf   : >> { %v997_v30 = vpop.f32.mrb[0].mxu0 }
 0x1d0   : >> { %vm338_vm5 = vcmp.ge.f32.partialorder %v997_v30, -2.3025851  ;;  %v341_v31 = vmul.f32 1.442695, %v997_v30  ;;  %v328_v32 = vpop.f32.mrb[1].mxu0 }
 0x1d1   : >> { %vm337_vm6 = vcmp.ge.f32.partialorder %v328_v32, -2.3025851  ;;  %v339_v33 = vmul.f32 1.442695, %v328_v32 }
 0x1d2   : >> { %1123 = vpow2.f32 %v341_v31  ;;  %vm1287_vm7 = vmpackc.low %vm338_vm5, %vm337_vm6 }
 0x1d3   : >> { %1125 = vpow2.f32 %v339_v33 }
 0x1dc   : >> { %v1124_v35 = vpop.eup %1123 }
 0x1dd   : >> { %v1126_v36 = vpop.eup %1125 }
 0x1de   : >> { %v1047_v37 = vpack.c.bf16 %v1124_v35, %v1126_v36 }
 0x1e0   : >> { %1049 = vmatpush3.bf16.msk.msra.mxu1 %vm1287_vm7, %v1047_v37  ;;  %1056 = vmatpush3.bf16.msk.msra.mxu0 %vm1287_vm7, %v1047_v37 }
 0x1e1   : >> { %1050 = vmatprep.subr.bf16.mxu1 %v1177_v28  ;;  %1060 = vmatprep.subr.bf16.mxu0 %v1177_v28 }
 0x1e3   : >> { %1003 = vmatmul.mubr.msk.f32.vlgmr.msra.gmra.mrb[0].mxu1 %vm345_vm8, %v1180_v38 }
 0x1e4   : >> { %1009 = vmatprep.mubr.msk.f32.mxu1 %vm1178_vm4, %v1179_v29  ;;  %1052 = vmatpush3.bf16.msra.mxu1 %v1051_v39 }
 0x1e5   : >> { %1057 = vmatprep.subr.bf16.mxu1 %v1177_v28 }
 0x2b6   : >> { %v415_v40 = vpop.f32.mrb[0].mxu1 }
 0x2b7   : >> { %1127 = vrcp.f32 %v415_v40  ;;  %v1004_v41 = vpop.f32.mrb[1].mxu1 }
 0x2c1   : >> { %v1128_v42 = vpop.eup %1127 }
 0x2c2   : >> { %v420_v43 = vmul.f32 %v1128_v42, %v415_v40 }
 0x2c4   : >> { %v421_v44 = vadd.f32 1.0, %v420_v43 }
 0x2c6   : >> { %v422_v45 = vmul.f32 0.5, %v421_v44 }
 0x2c8   : >> { %1010 = vmatmul.mubr.msk.f32.vlgmr.msra.gmra.mrb[2].mxu1 %vm345_vm8, %v422_v45  ;;  %1017 = vmatmul.mubr.msk.f32.vlgmr.msra.gmra.mrb[2].mxu0 %vm345_vm8, %v422_v45 }
 0x2c9   : >> { %1063 = vmatpush3.bf16.msk.msra.mxu0 %vm1287_vm7, %v1047_v37  ;;  %1059 = vmatpush3.bf16.msra.mxu1 %v1051_v39 }
 0x2ca   : >> { %1023 = vmatprep.mubr.msk.f32.mxu1 %vm1178_vm4, %v1179_v29  ;;  %1030 = vmatprep.mubr.msk.f32.mxu0 %vm1178_vm4, %v1179_v29 }
 0x2cb   : >> { %1064 = vmatprep.subr.bf16.mxu1 %v1177_v28 }
 0x39b   : >> { %v492_v46 = vpop.f32.mrb[2].mxu1  ;;  %v562_v47 = vpop.f32.mrb[2].mxu0 }
 0x39c   : >> { %v566_v48 = vmul.f32 %v1128_v42, %v562_v47  ;;  %v1011_v49 = vpop.f32.mrb[3].mxu1  ;;  %v1018_v50 = vpop.f32.mrb[3].mxu0 }
 0x39e   : >> { %v567_v51 = vadd.f32 %v566_v48, %v422_v45 }
 0x3a0   : >> { %v568_v52 = vmul.f32 0.5, %v567_v51 }
 0x3a2   : >> { %1024 = vmatmul.mubr.msk.f32.vlgmr.msra.gmra.mrb[4].mxu1 %vm345_vm8, %v568_v52  ;;  %1031 = vmatmul.mubr.msk.f32.vlgmr.msra.gmra.mrb[4].mxu0 %vm345_vm8, %v568_v52 }
 0x3a3   : >> { %1066 = vmatpush3.bf16.msra.mxu1 %v1051_v39  ;;  %1037 = vmatprep.mubr.msk.f32.mxu1 %vm1178_vm4, %v1179_v29 }
 0x475   : >> { %v638_v53 = vpop.f32.mrb[4].mxu1  ;;  %v708_v54 = vpop.f32.mrb[4].mxu0 }
 0x476   : >> { %v789_v55 = vrot.slane %v638_v53, 7  ;;  %v712_v56 = vmul.f32 %v1128_v42, %v708_v54  ;;  %v1025_v57 = vpop.f32.mrb[5].mxu1  ;;  %v1032_v58 = vpop.f32.mrb[5].mxu0 }
 0x478   : >> { %v795_v59 = vsel %vm794_vm9, %v492_v46, %v789_v55  ;;  %v713_v60 = vadd.f32 %v712_v56, %v568_v52 }
 0x47a   : >> { %v714_v61 = vmul.f32 0.5, %v713_v60 }
 0x47c   : >> { %1038 = vmatmul.mubr.msk.f32.vlgmr.msra.gmra.mrb[6].mxu1 %vm345_vm8, %v714_v61 }
 0x54d   : > { %210 = sbr.rel (!%p208_p9) target bundleno = 85 (0x55), region = 115 }
 0x54f   : >> { %v784_v62 = vpop.f32.mrb[6].mxu1 }
 0x550   : >> { %v792_v63 = vrot.slane %v784_v62, 6  ;;  %v1039_v1 = vpop.f32.mrb[7].mxu1 }
 0x552   : >> { %v797_v2 = vsel %vm796_vm10, %v795_v59, %v792_v63 }
 0x553   : >> { %801 = vst.msk [vmem:[%s799_s14] sm:$0x7] %vm800_vm11, %v797_v2 }
 0x554   : > { %808 = sbr.rel (!%p1233_p3) target bundleno = 1372 (0x55c), region = 43  ;;  %s966_s0 = sshll.u32 (%p1233_p3), %s1163_s16, 2 }
 0x555   : > { %s813_s24 = scalar_lea.vmem (%p1233_p3), %s1338_s3, %s966_s0 }
 0x55a   : > { %v829_v3 = vld [vmem:[%s1254_s6] sm:$0xf] (%p1233_p3)  ;;  %v831_v4 = vld [vmem:[%s1254_s6 + $0x4] sm:$0xf] (%p1233_p3) }
 0x55b   : > { %830 = vst [vmem:[%s813_s24] sm:$0xf] %v829_v3  ;;  %832 = vst [vmem:[%s813_s24 + $0xc] sm:$0xf] %v831_v4 }
 0x55c PF: > { %s14_s18 = sadd.s32 1, %s1171_s18   ;;  %s1342_s14 = smov %s1159_s15 }
 0x55d   : > { %p11_p10 = scmp.ge.s32.totalorder %s14_s18, 5   ;;  %s1343_s15 = smov %s1242_s23 }
 0x55e   : > { %s1344_s16 = smov %s1167_s17  ;;  %s1345_s17 = smov %s1347_s19 }
 0x55f   :  { %13 = sbr.rel (!%p11_p10) target bundleno = 5 (0x5), region = 126 }

</bundles_post_ra>
